<compile_context>
chip_gen: v7x
topology: tpu7x:2x2x1
jax: 0.10.0
libtpu: 0.0.40
codegen_flags: <defaults>
</compile_context>

<pallas_src>
import jax
import jax.numpy as jnp
from jax.experimental import pallas as pl
from jax.experimental.pallas import tpu as pltpu

# ----------------------------- sizes (small, consistent with the forward) ---
B = 2       # batch
L = 8       # language sequence length
NP = 4      # noun phrases per caption (interface parity only)
O = 16      # number of object masks / proposals
F = 32      # visual (mask) feature dim
H = 32      # bert hidden dim
VOCAB = 64  # toy vocabulary
EPS = 1e-12


def _layernorm(x, gamma, beta):
    """One-pass LayerNorm over the last axis. x: (rows, H); gamma/beta: (1, H)."""
    n = x.shape[-1]
    s = jnp.sum(x, axis=-1, keepdims=True)
    ss = jnp.sum(x * x, axis=-1, keepdims=True)
    mean = s * (1.0 / n)
    # clamp: one-pass E[x^2]-E[x]^2 can cancel to a tiny negative in f32
    var = jnp.maximum(ss * (1.0 / n) - mean * mean, 0.0)
    inv = jax.lax.rsqrt(var + EPS)
    return (x - mean) * inv * gamma + beta


def _png_kernel(
    sent_ref,   # (B*L, 1) int32   token ids
    ltab_ref,   # (VOCAB, H)       pre-folded language table = emb_table @ W_l + b_l
    feat_ref,   # (B*O, F)         mask features
    pos_ref,    # (B*O, 4)         box coords
    wf_ref,     # (F, H)           0.5 * W_f (scale pre-folded)
    wp_ref,     # (4, H)           0.5 * W_p (scale pre-folded)
    vecs_ref,   # (8, H)           rows: g_l, beta_l, b_fp, g_v, beta_v, pad...
    out_ref,    # (B*L, O)
):
    bl = sent_ref.shape[0]          # B*L
    bo = feat_ref.shape[0]          # B*O
    vocab = ltab_ref.shape[0]
    o_ = out_ref.shape[1]
    b_ = bo // o_                   # batch
    l_ = bl // b_                   # seq len

    # ---- packed small vectors (one (8,H) tile, sliced once) ----
    vecs = vecs_ref[...]
    g_l, beta_l = vecs[0:1, :], vecs[1:2, :]
    b_fp, g_v, beta_v = vecs[2:3, :], vecs[3:4, :], vecs[4:5, :]

    # ---- language branch: fused embedding gather + projection + bias ----
    # lang_table = emb_table @ W_l + b_l was folded at pack time, so one
    # one-hot matmul does gather, projection and bias in a single MXU push.
    ids = sent_ref[...]                                           # (B*L, 1)
    lane = jax.lax.broadcasted_iota(jnp.int32, (bl, vocab), 1)    # (B*L, VOCAB)
    onehot = (lane == ids).astype(jnp.float32)
    lang = jnp.dot(onehot, ltab_ref[...],
                   preferred_element_type=jnp.float32)            # (B*L, H)
    lang = _layernorm(lang, g_l, beta_l)

    # ---- visual branch: two accumulated matmuls (0.5 folded into weights) ----
    img = (jnp.dot(feat_ref[...], wf_ref[...], preferred_element_type=jnp.float32)
           + jnp.dot(pos_ref[...], wp_ref[...], preferred_element_type=jnp.float32)
           + b_fp)                                                # (B*O, H)
    img = _layernorm(img, g_v, beta_v)

    # ---- output_lang @ output_img^T : ONE MXU push over the whole batch ----
    # Full (B*L, B*O) product contracting H of both operands (no transpose),
    # then select the per-batch diagonal (L, O) blocks and store once.
    s_full = jax.lax.dot_general(
        lang, img,
        dimension_numbers=(((1,), (1,)), ((), ())),
        preferred_element_type=jnp.float32)                       # (B*L, B*O)

    rows = jax.lax.broadcasted_iota(jnp.int32, (bl, o_), 0)
    out = s_full[:, 0:o_]
    for b in range(1, b_):                                        # static, B=2
        out = jnp.where(rows < b * l_, out, s_full[:, b * o_:(b + 1) * o_])
    out_ref[...] = out                                            # single store


def pack_params(params):
    """One-time parameter prep (not per-call): fold emb@W_l+b_l, fold the 0.5
    visual scale, pack the remaining (1,H) vectors into one (8,H) tile."""
    h = params["W_l"].shape[1]
    lang_table = params["emb_table"] @ params["W_l"] + params["b_l"]    # (VOCAB, H)
    w_f = 0.5 * params["W_f"]                                           # (F, H)
    w_p = 0.5 * params["W_p"]                                           # (4, H)
    b_fp = 0.5 * (params["b_f"] + params["b_p"])                        # (1, H)
    vecs = jnp.concatenate(
        [params["g_l"], params["beta_l"], b_fp,
         params["g_v"], params["beta_v"],
         jnp.zeros((3, h), jnp.float32)],                               # pad to 8 rows
        axis=0)                                                         # (8, H)
    return {"lang_table": lang_table, "W_f": w_f, "W_p": w_p, "vecs": vecs}


def panoptic_narrative_grounding(sent_ids, pos, feat, noun_phrases, packed):
    """sent_ids: (B, L) int32; pos: (B, O, 4); feat: (B, O, F);
    noun_phrases: (B, L, NP). Returns (B, L, O) float32."""
    # TODO(synk): the real BertEncoder's cross-modal transformer layers and its
    # noun_phrases-based token grouping are not reproduced; noun_phrases is
    # accepted for interface parity but unused by the synthetic encoder.
    del noun_phrases

    b, l = sent_ids.shape
    o, f = feat.shape[1], feat.shape[2]
    p4 = pos.shape[2]

    # Contiguous reshapes only (metadata-only in XLA); no concat, no extra HBM hop.
    sent_flat = sent_ids.reshape(b * l, 1).astype(jnp.int32)
    feat_flat = feat.reshape(b * o, f)
    pos_flat = pos.reshape(b * o, p4)

    args = (sent_flat, packed["lang_table"], feat_flat, pos_flat,
            packed["W_f"], packed["W_p"], packed["vecs"])

    vocab, h = packed["lang_table"].shape
    flops = 2 * (b * l * vocab * h          # one-hot gather+projection matmul
                 + b * o * f * h            # feat projection
                 + b * o * p4 * h           # pos projection
                 + (b * l) * (b * o) * h)   # full lang @ img^T
    bytes_accessed = sum(int(a.size) * a.dtype.itemsize for a in args) + b * l * o * 4
    cost = pl.CostEstimate(flops=flops,
                           transcendentals=b * l + b * o,   # rsqrt per LN row
                           bytes_accessed=bytes_accessed)

    vmem = pl.BlockSpec(memory_space=pltpu.MemorySpace.VMEM)
    out_flat = pl.pallas_call(
        _png_kernel,
        out_shape=jax.ShapeDtypeStruct((b * l, o), jnp.float32),
        in_specs=[vmem] * len(args),
        out_specs=vmem,
        cost_estimate=cost,
    )(*args)
    return out_flat.reshape(b, l, o)        # free contiguous reshape


def _reference(sent_ids, pos, feat, params):
    emb = params["emb_table"][sent_ids]
    lang = emb @ params["W_l"] + params["b_l"]
    m = lang.mean(-1, keepdims=True)
    v = ((lang - m) ** 2).mean(-1, keepdims=True)
    lang = (lang - m) / jnp.sqrt(v + EPS) * params["g_l"] + params["beta_l"]

    vis = feat @ params["W_f"] + params["b_f"]
    box = pos @ params["W_p"] + params["b_p"]
    img = 0.5 * (vis + box)
    m = img.mean(-1, keepdims=True)
    v = ((img - m) ** 2).mean(-1, keepdims=True)
    img = (img - m) / jnp.sqrt(v + EPS) * params["g_v"] + params["beta_v"]

    return jnp.einsum("blh,boh->blo", lang, img)


if __name__ == "__main__":
    key = jax.random.PRNGKey(0)
    ks = jax.random.split(key, 14)

    params = {
        "emb_table": jax.random.normal(ks[0], (VOCAB, H), jnp.float32) * 0.02,
        "W_l": jax.random.normal(ks[1], (H, H), jnp.float32) * 0.02,
        "b_l": jax.random.normal(ks[8], (1, H), jnp.float32) * 0.01,
        "g_l": 1.0 + jax.random.normal(ks[9], (1, H), jnp.float32) * 0.05,
        "beta_l": jax.random.normal(ks[10], (1, H), jnp.float32) * 0.01,
        "W_f": jax.random.normal(ks[2], (F, H), jnp.float32) * 0.02,
        "b_f": jax.random.normal(ks[11], (1, H), jnp.float32) * 0.01,
        "W_p": jax.random.normal(ks[3], (4, H), jnp.float32) * 0.02,
        "b_p": jax.random.normal(ks[12], (1, H), jnp.float32) * 0.01,
        "g_v": 1.0 + jax.random.normal(ks[13], (1, H), jnp.float32) * 0.05,
        "beta_v": jax.random.normal(ks[7], (1, H), jnp.float32) * 0.01,
    }

    sent_ids = jax.random.randint(ks[4], (B, L), 0, VOCAB, jnp.int32)
    feat = jax.random.normal(ks[5], (B, O, F), jnp.float32)
    pos = jax.random.uniform(ks[6], (B, O, 4), jnp.float32)
    noun_phrases = (jax.random.uniform(ks[7], (B, L, NP)) > 0.5).astype(jnp.float32)

    packed = pack_params(params)   # one-time parameter prep (not per-call)

    out = panoptic_narrative_grounding(sent_ids, pos, feat, noun_phrases, packed)
    out = jax.block_until_ready(out)

    ref = _reference(sent_ids, pos, feat, params)
    assert out.shape == (B, L, O), out.shape
    assert jnp.allclose(out, ref, atol=1e-4, rtol=1e-4), float(jnp.abs(out - ref).max())

    print("KERNEL_OK")
</pallas_src>

<mosaic_0001>
module attributes {stable_mosaic.version = 11 : i64} {
  func.func @_png_kernel(%arg0: memref<16x1xi32, #tpu.memory_space<vmem>>, %arg1: memref<64x32xf32, #tpu.memory_space<vmem>>, %arg2: memref<32x32xf32, #tpu.memory_space<vmem>>, %arg3: memref<32x4xf32, #tpu.memory_space<vmem>>, %arg4: memref<32x32xf32, #tpu.memory_space<vmem>>, %arg5: memref<4x32xf32, #tpu.memory_space<vmem>>, %arg6: memref<8x32xf32, #tpu.memory_space<vmem>>, %arg7: memref<16x16xf32, #tpu.memory_space<vmem>>) attributes {dimension_semantics = [], scalar_prefetch = 0 : i64, scratch_operands = 0 : i64, tpu.core_type = #tpu.core_type<tc>} {
    %c0 = arith.constant 0 : index
    %c0_0 = arith.constant 0 : index
    %0 = vector.load %arg6[%c0, %c0_0] : memref<8x32xf32, #tpu.memory_space<vmem>>, vector<8x32xf32>
    %1 = vector.extract_strided_slice %0 {offsets = [0, 0], sizes = [1, 32], strides = [1, 1]} : vector<8x32xf32> to vector<1x32xf32>
    %2 = vector.extract_strided_slice %0 {offsets = [1, 0], sizes = [1, 32], strides = [1, 1]} : vector<8x32xf32> to vector<1x32xf32>
    %3 = vector.extract_strided_slice %0 {offsets = [2, 0], sizes = [1, 32], strides = [1, 1]} : vector<8x32xf32> to vector<1x32xf32>
    %4 = vector.extract_strided_slice %0 {offsets = [3, 0], sizes = [1, 32], strides = [1, 1]} : vector<8x32xf32> to vector<1x32xf32>
    %5 = vector.extract_strided_slice %0 {offsets = [4, 0], sizes = [1, 32], strides = [1, 1]} : vector<8x32xf32> to vector<1x32xf32>
    %c0_1 = arith.constant 0 : index
    %c0_2 = arith.constant 0 : index
    %6 = vector.load %arg0[%c0_1, %c0_2] : memref<16x1xi32, #tpu.memory_space<vmem>>, vector<16x1xi32>
    %7 = tpu.iota {dimensions = array<i32: 1>} : vector<16x64xi32>
    %8 = vector.broadcast %6 : vector<16x1xi32> to vector<16x64xi32>
    %9 = arith.cmpi eq, %7, %8 : vector<16x64xi32>
    %10 = arith.extui %9 : vector<16x64xi1> to vector<16x64xi32>
    %11 = arith.sitofp %10 : vector<16x64xi32> to vector<16x64xf32>
    %c0_3 = arith.constant 0 : index
    %c0_4 = arith.constant 0 : index
    %12 = vector.load %arg1[%c0_3, %c0_4] : memref<64x32xf32, #tpu.memory_space<vmem>>, vector<64x32xf32>
    %cst = arith.constant dense<0.000000e+00> : vector<16x32xf32>
    %13 = tpu.matmul %11, %12, %cst {dimension_numbers = #tpu.dot_dimension_numbers<[1], [0], [0], [1], [0, 0, 1, 1], [], []>} : vector<16x64xf32>, vector<64x32xf32>, vector<16x32xf32> -> vector<16x32xf32>
    %cst_5 = arith.constant dense<0.000000e+00> : vector<16xf32>
    %14 = vector.multi_reduction <add>, %13, %cst_5 [1] : vector<16x32xf32> to vector<16xf32>
    %15 = vector.shape_cast %14 : vector<16xf32> to vector<16x1xf32>
    %16 = arith.mulf %13, %13 : vector<16x32xf32>
    %cst_6 = arith.constant dense<0.000000e+00> : vector<16xf32>
    %17 = vector.multi_reduction <add>, %16, %cst_6 [1] : vector<16x32xf32> to vector<16xf32>
    %18 = vector.shape_cast %17 : vector<16xf32> to vector<16x1xf32>
    %cst_7 = arith.constant 3.125000e-02 : f32
    %19 = vector.broadcast %cst_7 : f32 to vector<16x1xf32>
    %20 = arith.mulf %15, %19 : vector<16x1xf32>
    %cst_8 = arith.constant 3.125000e-02 : f32
    %21 = vector.broadcast %cst_8 : f32 to vector<16x1xf32>
    %22 = arith.mulf %18, %21 : vector<16x1xf32>
    %23 = arith.mulf %20, %20 : vector<16x1xf32>
    %24 = arith.subf %22, %23 : vector<16x1xf32>
    %cst_9 = arith.constant 0.000000e+00 : f32
    %25 = vector.broadcast %cst_9 : f32 to vector<16x1xf32>
    %26 = arith.maximumf %24, %25 : vector<16x1xf32>
    %cst_10 = arith.constant 9.99999996E-13 : f32
    %27 = vector.broadcast %cst_10 : f32 to vector<16x1xf32>
    %28 = arith.addf %26, %27 : vector<16x1xf32>
    %29 = math.rsqrt %28 : vector<16x1xf32>
    %30 = vector.broadcast %20 : vector<16x1xf32> to vector<16x32xf32>
    %31 = arith.subf %13, %30 : vector<16x32xf32>
    %32 = vector.broadcast %29 : vector<16x1xf32> to vector<16x32xf32>
    %33 = arith.mulf %31, %32 : vector<16x32xf32>
    %34 = vector.broadcast %1 : vector<1x32xf32> to vector<16x32xf32>
    %35 = arith.mulf %33, %34 : vector<16x32xf32>
    %36 = vector.broadcast %2 : vector<1x32xf32> to vector<16x32xf32>
    %37 = arith.addf %35, %36 : vector<16x32xf32>
    %c0_11 = arith.constant 0 : index
    %c0_12 = arith.constant 0 : index
    %38 = vector.load %arg2[%c0_11, %c0_12] : memref<32x32xf32, #tpu.memory_space<vmem>>, vector<32x32xf32>
    %c0_13 = arith.constant 0 : index
    %c0_14 = arith.constant 0 : index
    %39 = vector.load %arg4[%c0_13, %c0_14] : memref<32x32xf32, #tpu.memory_space<vmem>>, vector<32x32xf32>
    %cst_15 = arith.constant dense<0.000000e+00> : vector<32x32xf32>
    %40 = tpu.matmul %38, %39, %cst_15 {dimension_numbers = #tpu.dot_dimension_numbers<[1], [0], [0], [1], [0, 0, 1, 1], [], []>} : vector<32x32xf32>, vector<32x32xf32>, vector<32x32xf32> -> vector<32x32xf32>
    %c0_16 = arith.constant 0 : index
    %c0_17 = arith.constant 0 : index
    %41 = vector.load %arg3[%c0_16, %c0_17] : memref<32x4xf32, #tpu.memory_space<vmem>>, vector<32x4xf32>
    %c0_18 = arith.constant 0 : index
    %c0_19 = arith.constant 0 : index
    %42 = vector.load %arg5[%c0_18, %c0_19] : memref<4x32xf32, #tpu.memory_space<vmem>>, vector<4x32xf32>
    %cst_20 = arith.constant dense<0.000000e+00> : vector<32x32xf32>
    %43 = tpu.matmul %41, %42, %cst_20 {dimension_numbers = #tpu.dot_dimension_numbers<[1], [0], [0], [1], [0, 0, 1, 1], [], []>} : vector<32x4xf32>, vector<4x32xf32>, vector<32x32xf32> -> vector<32x32xf32>
    %44 = arith.addf %40, %43 : vector<32x32xf32>
    %45 = vector.broadcast %3 : vector<1x32xf32> to vector<32x32xf32>
    %46 = arith.addf %44, %45 : vector<32x32xf32>
    %cst_21 = arith.constant dense<0.000000e+00> : vector<32xf32>
    %47 = vector.multi_reduction <add>, %46, %cst_21 [1] : vector<32x32xf32> to vector<32xf32>
    %48 = vector.shape_cast %47 : vector<32xf32> to vector<32x1xf32>
    %49 = arith.mulf %46, %46 : vector<32x32xf32>
    %cst_22 = arith.constant dense<0.000000e+00> : vector<32xf32>
    %50 = vector.multi_reduction <add>, %49, %cst_22 [1] : vector<32x32xf32> to vector<32xf32>
    %51 = vector.shape_cast %50 : vector<32xf32> to vector<32x1xf32>
    %cst_23 = arith.constant 3.125000e-02 : f32
    %52 = vector.broadcast %cst_23 : f32 to vector<32x1xf32>
    %53 = arith.mulf %48, %52 : vector<32x1xf32>
    %cst_24 = arith.constant 3.125000e-02 : f32
    %54 = vector.broadcast %cst_24 : f32 to vector<32x1xf32>
    %55 = arith.mulf %51, %54 : vector<32x1xf32>
    %56 = arith.mulf %53, %53 : vector<32x1xf32>
    %57 = arith.subf %55, %56 : vector<32x1xf32>
    %cst_25 = arith.constant 0.000000e+00 : f32
    %58 = vector.broadcast %cst_25 : f32 to vector<32x1xf32>
    %59 = arith.maximumf %57, %58 : vector<32x1xf32>
    %cst_26 = arith.constant 9.99999996E-13 : f32
    %60 = vector.broadcast %cst_26 : f32 to vector<32x1xf32>
    %61 = arith.addf %59, %60 : vector<32x1xf32>
    %62 = math.rsqrt %61 : vector<32x1xf32>
    %63 = vector.broadcast %53 : vector<32x1xf32> to vector<32x32xf32>
    %64 = arith.subf %46, %63 : vector<32x32xf32>
    %65 = vector.broadcast %62 : vector<32x1xf32> to vector<32x32xf32>
    %66 = arith.mulf %64, %65 : vector<32x32xf32>
    %67 = vector.broadcast %4 : vector<1x32xf32> to vector<32x32xf32>
    %68 = arith.mulf %66, %67 : vector<32x32xf32>
    %69 = vector.broadcast %5 : vector<1x32xf32> to vector<32x32xf32>
    %70 = arith.addf %68, %69 : vector<32x32xf32>
    %cst_27 = arith.constant dense<0.000000e+00> : vector<16x32xf32>
    %71 = tpu.matmul %37, %70, %cst_27 {dimension_numbers = #tpu.dot_dimension_numbers<[1], [1], [0], [0], [0, 0, 1, 0], [], []>} : vector<16x32xf32>, vector<32x32xf32>, vector<16x32xf32> -> vector<16x32xf32>
    %72 = tpu.iota {dimensions = array<i32: 0>} : vector<16x16xi32>
    %73 = vector.extract_strided_slice %71 {offsets = [0, 0], sizes = [16, 16], strides = [1, 1]} : vector<16x32xf32> to vector<16x16xf32>
    %c8_i32 = arith.constant 8 : i32
    %74 = vector.broadcast %c8_i32 : i32 to vector<16x16xi32>
    %75 = arith.cmpi slt, %72, %74 : vector<16x16xi32>
    %76 = vector.extract_strided_slice %71 {offsets = [0, 16], sizes = [16, 16], strides = [1, 1]} : vector<16x32xf32> to vector<16x16xf32>
    %77 = arith.select %75, %73, %76 : vector<16x16xi1>, vector<16x16xf32>
    %c0_28 = arith.constant 0 : index
    %c0_29 = arith.constant 0 : index
    %78 = vector.load %arg7[%c0_28, %c0_29] : memref<16x16xf32, #tpu.memory_space<vmem>>, vector<16x16xf32>
    tpu.vector_store %arg7[%c0_28, %c0_29], %77 {strides = array<i32>} : memref<16x16xf32, #tpu.memory_space<vmem>>, vector<16x16xf32>,
    return
  }
}

</mosaic_0001>

<bundles_post_ra>
// kernel: tpu_custom_call.1
= control target key start
LH: loop header
LB: loop body
LE: loop exit
PB: predicated region body
PF: predicated region fallthrough
CT: control target
= control target key end

     0   :  { %v789_v2 = vmov 0   ;;  %s1003_s0 = inlined_call_operand.vmem [shape: s32[16,1], index: 0, kind: input, shape index: {}]   ;;  %s1004_s1 = inlined_call_operand.vmem [shape: f32[64,32], index: 1, kind: input, shape index: {}]   ;;  %s1005_s2 = inlined_call_operand.vmem [shape: f32[32,32], index: 2, kind: input, shape index: {}]   ;;  %s1006_s3 = inlined_call_operand.vmem [shape: f32[32,4], index: 3, kind: input, shape index: {}]   ;;  %s1007_s4 = inlined_call_operand.vmem [shape: f32[32,32], index: 4, kind: input, shape index: {}]   ;;  %s1008_s5 = inlined_call_operand.vmem [shape: f32[4,32], index: 5, kind: input, shape index: {}]   ;;  %s1009_s6 = inlined_call_operand.vmem [shape: f32[8,32], index: 6, kind: input, shape index: {}]   ;;  %s1010_s7 = inlined_call_operand.hbm [shape: f32[16,16], index: 7, kind: output, shape index: {}]  }
   0x1   :  { %v28_v0 = vld [vmem:[%s1003_s0] sm:$0xff]  ;;  %752 = vset.pattern.permute.xlu0 %v789_v2  ;;  %v45_v3 = vld [vmem:[%s1004_s1 + $0x8] sm:$0xff]  ;;  %v46_v4 = vld [vmem:[%s1004_s1 + $0x10] sm:$0xff] }
   0x2   :  { %v44_v1 = vld [vmem:[%s1004_s1] sm:$0xff]  ;;  %v47_v5 = vld [vmem:[%s1004_s1 + $0x18] sm:$0xff]  ;;  %33 = vperm.xlu0 %752, %v28_v0   ;;  %v29_v6 = vld [vmem:[%s1003_s0 + $0x8] sm:$0xff] }
   0x3   :  { %v706_v7 = vpack.c.bf16 %v45_v3, %v44_v1  ;;  %v710_v8 = vpack.c.bf16 %v47_v5, %v46_v4  ;;  %v48_v9 = vld [vmem:[%s1004_s1 + $0x20] sm:$0xff]  ;;  %v49_v10 = vld [vmem:[%s1004_s1 + $0x28] sm:$0xff]  ;;  %v185_v14 = vld [vmem:[%s1007_s4 + $0x10] sm:$0xff] }
   0x4   :  { %v183_v11 = vld [vmem:[%s1007_s4] sm:$0xff]  ;;  %v184_v12 = vld [vmem:[%s1007_s4 + $0x8] sm:$0xff]  ;;  %v186_v15 = vld [vmem:[%s1007_s4 + $0x18] sm:$0xff] }
   0x5   :  { %707 = vmatprep.subr.bf16.mxu0 %v706_v7  ;;  %v722_v13 = vpack.c.bf16 %v184_v12, %v183_v11 }
   0x6   :  { %12 = vsyncpa [#allocation3], 0  ;;  %709 = vmatpush3.bf16.msra.mxu0 %v706_v7  ;;  %v726_v16 = vpack.c.bf16 %v186_v15, %v185_v14  ;;  %36 = vperm.xlu0 %752, %v29_v6   ;;  %v714_v17 = vpack.c.bf16 %v49_v10, %v48_v9  ;;  %v50_v18 = vld [vmem:[%s1004_s1 + $0x30] sm:$0xff]  ;;  %v51_v19 = vld [vmem:[%s1004_s1 + $0x38] sm:$0xff]  ;;  %vm134_vm0 = vcmask 261120   ;;  %vm205_vm1 = vcmask 1043456  }
   0x7   :  { %711 = vmatprep.subr.bf16.mxu0 %v710_v8  ;;  %723 = vmatprep.subr.bf16.mxu1 %v722_v13  ;;  %v179_v20 = vld [vmem:[%s1005_s2] sm:$0xff]  ;;  %v718_v21 = vpack.c.bf16 %v51_v19, %v50_v18  ;;  %v180_v22 = vld [vmem:[%s1005_s2 + $0x8] sm:$0xff]  ;;  %v181_v23 = vld [vmem:[%s1005_s2 + $0x10] sm:$0xff]  ;;  %v30_v26 = vlaneseq  ;;  %vm52_vm2 = vcmask 523264   ;;  %v790_v29 = vmov 0.0  }
   0x8   :  { %725 = vmatpush3.bf16.msra.mxu1 %v722_v13  ;;  %689 = vmatprep.mubr.msk.f32.mxu1 %vm134_vm0, %v179_v20  ;;  %v191_v24 = vld [vmem:[%s1008_s5] sm:$0xf]  ;;  %v182_v25 = vld [vmem:[%s1005_s2 + $0x18] sm:$0xff]  ;;  %vm192_vm5 = vcmask 31744   ;;  %v188_v34 = vld [vmem:[%s1006_s3 + $0x8] sm:$0xff]  ;;  %vm587_vm7 = vcmask 130048  }
   0x9   :  { %727 = vmatprep.subr.bf16.mxu1 %v726_v16  ;;  %v31_v27 = vand.u32 127, %v30_v26  ;;  %v187_v32 = vld [vmem:[%s1006_s3] sm:$0xff]  ;;  %v189_v35 = vld [vmem:[%s1006_s3 + $0x10] sm:$0xff]  ;;  %v190_v36 = vld [vmem:[%s1006_s3 + $0x18] sm:$0xff]  ;;  %v910_v41 = vshrl.u32 %v30_v26, 7  ;;  %s791_s3 = smov 112  }
   0xa   :  { %713 = vmatpush3.bf16.msra.mxu0 %v710_v8  ;;  %v918_v44 = vld [vmem:[%s1009_s6] sm:$0xff]  ;;  %vm969_vm6 = vmpackc.low %vm134_vm0, %vm134_vm0  ;;  %s792_s6 = smov [#allocation2]  }
   0xb   :  { %715 = vmatprep.subr.bf16.mxu0 %v714_v17  ;;  %v393_v42 = vsub.s32 2, %v910_v41  ;;  %s595_s0 = sshll.u32 %s792_s6, 4  ;;  %s596_s0 = int_to_ptr.vmem [resolvable:$true] %s595_s0 }
   0xc   :  { %729 = vmatpush3.bf16.msra.mxu1 %v726_v16  ;;  %s765_s21 = scalar_lea.vmem %s596_s0, 256  ;;  %p770_p1 = scmp.lt.s32.totalorder %s596_s0, %s596_s0 }
   0xd   :  { %v394_v46 = vrot.slane %v918_v44, %v393_v42  ;;  %p766_p0 = scmp.ne.s32.totalorder %s596_s0, %s765_s21  ;;  %p771_p2 = scmp.lt.s32.totalorder %s765_s21, %s765_s21 }
   0xe   :  { %717 = vmatpush3.bf16.msra.mxu0 %v714_v17 }
   0xf   :  { %719 = vmatprep.subr.bf16.mxu0 %v718_v21  ;;  %690 = vmatmul.mubr.msk.f32.vlgmr.msra.gmra.mrb[0].mxu1 %vm134_vm0, %v180_v22  ;;  %p772_p3 = por %p771_p2, %p770_p1 }
  0x10   :  { %692 = vmatprep.mubr.msk.f32.mxu1 %vm134_vm0, %v181_v23 }
  0x11   :  { %p773_p4 = pnand %p772_p3, %p766_p0 }
  0x12   :  { %721 = vmatpush3.bf16.msra.mxu0 %v718_v21 }
  0x13   :  { %673 = vmatprep.subr.msk.mxu0 %vm205_vm1, %v191_v24  ;;  %693 = vmatmul.mubr.msk.f32.gmra.mrb[2].mxu1 %vm134_vm0, %v182_v25 }
  0x81   :  { %v34_v28 = vpop.permute.xlu0 %33 }
  0x82   :  { %vm38_vm3 = vcmp.eq.s32.totalorder %v31_v27, %v34_v28 }
  0x83   :  { %v606_v30 = vsel %vm38_vm3, 1.0, %v790_v29 }
  0x84   :  { %670 = vmatprep.mubr.msk.f32.mxu0 %vm52_vm2, %v606_v30 }
  0x85   :  { %v37_v31 = vpop.permute.xlu0 %36 }
  0x86   :  { %vm39_vm4 = vcmp.eq.s32.totalorder %v31_v27, %v37_v31 }
  0x87   :  { %v607_v33 = vsel %vm39_vm4, 1.0, %v790_v29 }
  0x88   :  { %671 = vmatmul.mubr.msk.f32.vlgmr.msra.gmra.mrb[0].mxu0 %vm52_vm2, %v607_v33 }
  0x89   :  { %674 = vmatpush3.msk.msra.mxu0 %vm205_vm1, %v191_v24  ;;  %675 = vmatprep.mubr.msk.f32.mxu0 %vm192_vm5, %v187_v32  ;;  %v465_v32 = vsub.s32 3, %v910_v41 }
  0x8c   :  { %676 = vmatmul.mubr.msk.f32.vlgmr.msra.gmra.mrb[2].mxu0 %vm192_vm5, %v188_v34 }
  0x8d   :  { %678 = vmatprep.mubr.msk.f32.mxu0 %vm192_vm5, %v189_v35 }
  0x90   :  { %679 = vmatmul.mubr.msk.f32.gmra.mrb[4].mxu0 %vm192_vm5, %v190_v36 }
  0xe2   :  { %v691_v37 = vpop.f32.mrb[0].mxu1 }
  0xe3   :  { %v372_v38 = vpop.f32.mrb[1].mxu1 }
  0xe6   :  { %v694_v39 = vpop.f32.mrb[2].mxu1 }
  0xe7   :  { %v382_v40 = vpop.f32.mrb[3].mxu1 }
 0x15b   :  { %v913_v43 = vpop.f32.mrb[0].mxu0 }
 0x15c   :  { %v920_v45 = vpop.f32.mrb[1].mxu0  ;;  %v142_v60 = vmul.f32 %v913_v43, %v913_v43  ;;  %v138_v10 = vsel %vm134_vm0, %v913_v43, 0.0 }
 0x15d   :  { %v135_v9 = vsel %vm134_vm0, %v920_v45, 0.0  ;;  %v141_v11 = vmul.f32 %v920_v45, %v920_v45 }
 0x15e   :  { %v146_v0 = vsel %vm134_vm0, %v142_v60, 0.0 }
 0x15f   :  { %v677_v47 = vpop.f32.mrb[2].mxu0  ;;  %v143_v12 = vsel %vm134_vm0, %v141_v11, 0.0 }
 0x160   :  { %v378_v48 = vadd.f32 %v691_v37, %v677_v47  ;;  %v275_v49 = vpop.f32.mrb[3].mxu0 }
 0x161   :  { %v373_v50 = vadd.f32 %v372_v38, %v275_v49  ;;  %v466_v38 = vrot.slane %v918_v44, %v465_v32 }
 0x162   :  { %v923_v51 = vadd.f32 %v394_v46, %v378_v48 }
 0x163   :  { %v925_v52 = vadd.f32 %v394_v46, %v373_v50  ;;  %v680_v53 = vpop.f32.mrb[4].mxu0 }
 0x164   :  { %v402_v54 = vsel %vm134_vm0, %v923_v51, 0.0  ;;  %v388_v55 = vadd.f32 %v694_v39, %v680_v53  ;;  %v285_v56 = vpop.f32.mrb[5].mxu0  ;;  %v412_v62 = vmul.f32 %v923_v51, %v923_v51  ;;  %v473_v39 = vsub.s32 4, %v910_v41 }
 0x165   :  { %403 = vadd.xlane.f32.xlu1 %v402_v54  ;;  %v411_v57 = vmul.f32 %v925_v52, %v925_v52  ;;  %v383_v58 = vadd.f32 %v382_v40, %v285_v56  ;;  %v399_v61 = vsel %vm134_vm0, %v925_v52, 0.0 }
 0x166   :  { %v938_v63 = vadd.f32 %v394_v46, %v388_v55  ;;  %v418_v1 = vsel %vm134_vm0, %v412_v62, 0.0 }
 0x167   :  { %v415_v59 = vsel %vm134_vm0, %v411_v57, 0.0  ;;  %v944_v3 = vadd.f32 %v394_v46, %v383_v58  ;;  %v474_v57 = vrot.slane %v918_v44, %v473_v39 }
 0x168   :  { %416 = vadd.xlane.f32.xlu0 %v415_v59  ;;  %v408_v2 = vsel %vm134_vm0, %v938_v63, 0.0  ;;  %v414_v5 = vmul.f32 %v938_v63, %v938_v63 }
 0x169   :  { %400 = vadd.xlane.f32.xlu1 %v399_v61  ;;  %v405_v4 = vsel %vm134_vm0, %v944_v3, 0.0  ;;  %v413_v7 = vmul.f32 %v944_v3, %v944_v3 }
 0x16a   :  { %v424_v6 = vsel %vm134_vm0, %v414_v5, 0.0 }
 0x16b   :  { %v421_v8 = vsel %vm134_vm0, %v413_v7, 0.0 }
 0x16c   :  { %147 = vadd.xlane.f32.xlu0 %v146_v0 }
 0x16d   :  { %419 = vadd.xlane.f32.xlu1 %v418_v1 }
 0x171   :  { %409 = vadd.xlane.f32.xlu1 %v408_v2 }
 0x175   :  { %406 = vadd.xlane.f32.xlu1 %v405_v4 }
 0x179   :  { %425 = vadd.xlane.f32.xlu1 %v424_v6 }
 0x17d   :  { %422 = vadd.xlane.f32.xlu1 %v421_v8 }
 0x181   :  { %136 = vadd.xlane.f32.xlu1 %v135_v9 }
 0x185   :  { %139 = vadd.xlane.f32.xlu1 %v138_v10 }
 0x189   :  { %144 = vadd.xlane.f32.xlu1 %v143_v12 }
 0x1f2   :  { %v404_v13 = vpop.xlane.xlu1 %403 }
 0x1f3   :  { %v428_v16 = vmul.f32 0.03125, %v404_v13 }
 0x1f5   :  { %v417_v14 = vpop.xlane.xlu0 %416  ;;  %v436_v21 = vmul.f32 %v428_v16, %v428_v16  ;;  %v456_v50 = vsub.f32 %v923_v51, %v428_v16 }
 0x1f6   :  { %v401_v15 = vpop.xlane.xlu1 %400  ;;  %v431_v18 = vmul.f32 0.03125, %v417_v14 }
 0x1f7   :  { %v427_v17 = vmul.f32 0.03125, %v401_v15 }
 0x1f9   :  { %v435_v19 = vmul.f32 %v427_v17, %v427_v17  ;;  %v455_v40 = vsub.f32 %v925_v52, %v427_v17  ;;  %v148_v1 = vpop.xlane.xlu0 %147 }
 0x1fa   :  { %v420_v20 = vpop.xlane.xlu1 %419  ;;  %v152_v8 = vmul.f32 0.03125, %v148_v1 }
 0x1fb   :  { %v439_v22 = vsub.f32 %v431_v18, %v435_v19  ;;  %v432_v23 = vmul.f32 0.03125, %v420_v20 }
 0x1fd   :  { %v443_v24 = vmax.f32 %v439_v22, 0.0  ;;  %v440_v25 = vsub.f32 %v432_v23, %v436_v21 }
 0x1fe   :  { %v410_v26 = vpop.xlane.xlu1 %409 }
 0x1ff   :  { %v447_v27 = vadd.f32 1e-12, %v443_v24  ;;  %v444_v28 = vmax.f32 %v440_v25, 0.0  ;;  %v430_v31 = vmul.f32 0.03125, %v410_v26 }
 0x201   :  { %753 = vrsqrt.f32 %v447_v27  ;;  %v448_v29 = vadd.f32 1e-12, %v444_v28  ;;  %v438_v34 = vmul.f32 %v430_v31, %v430_v31  ;;  %v458_v14 = vsub.f32 %v938_v63, %v430_v31 }
 0x202   :  { %v407_v30 = vpop.xlane.xlu1 %406 }
 0x203   :  { %755 = vrsqrt.f32 %v448_v29  ;;  %v429_v35 = vmul.f32 0.03125, %v407_v30  ;;  %v169_v29 = vsub.s32 0, %v910_v41 }
 0x205   :  { %v437_v47 = vmul.f32 %v429_v35, %v429_v35  ;;  %v457_v21 = vsub.f32 %v944_v3, %v429_v35  ;;  %v175_v3 = vsub.s32 1, %v910_v41  ;;  %v170_v32 = vrot.slane %v918_v44, %v169_v29 }
 0x206   :  { %v426_v33 = vpop.xlane.xlu1 %425 }
 0x207   :  { %v434_v36 = vmul.f32 0.03125, %v426_v33 }
 0x209   :  { %v442_v37 = vsub.f32 %v434_v36, %v438_v34 }
 0x20a   :  { %v423_v42 = vpop.xlane.xlu1 %422 }
 0x20b   :  { %v754_v46 = vpop.eup %753  ;;  %v446_v48 = vmax.f32 %v442_v37, 0.0  ;;  %v433_v49 = vmul.f32 0.03125, %v423_v42 }
 0x20c   :  { %v459_v53 = vmul.f32 %v754_v46, %v455_v40 }
 0x20d   :  { %v756_v54 = vpop.eup %755  ;;  %v450_v55 = vadd.f32 1e-12, %v446_v48  ;;  %v441_v56 = vsub.f32 %v433_v49, %v437_v47 }
 0x20e   :  { %v467_v58 = vmul.f32 %v466_v38, %v459_v53  ;;  %v137_v59 = vpop.xlane.xlu1 %136  ;;  %v460_v60 = vmul.f32 %v756_v54, %v456_v50 }
 0x20f   :  { %757 = vrsqrt.f32 %v450_v55  ;;  %v445_v61 = vmax.f32 %v441_v56, 0.0  ;;  %v149_v5 = vmul.f32 0.03125, %v137_v59 }
 0x210   :  { %v468_v62 = vmul.f32 %v466_v38, %v460_v60  ;;  %v475_v0 = vadd.f32 %v474_v57, %v467_v58 }
 0x211   :  { %v449_v52 = vadd.f32 1e-12, %v445_v61  ;;  %v153_v11 = vmul.f32 %v149_v5, %v149_v5  ;;  %v163_v33 = vsub.f32 %v920_v45, %v149_v5 }
 0x212   :  { %v140_v2 = vpop.xlane.xlu1 %139  ;;  %v476_v4 = vadd.f32 %v474_v57, %v468_v62 }
 0x213   :  { %759 = vrsqrt.f32 %v449_v52  ;;  %v150_v51 = vmul.f32 0.03125, %v140_v2 }
 0x214   :  { %v730_v7 = vpack.c.bf16 %v476_v4, %v475_v0 }
 0x215   :  { %v154_v9 = vmul.f32 %v150_v51, %v150_v51  ;;  %v164_v30 = vsub.f32 %v913_v43, %v150_v51 }
 0x216   :  { %732 = vmatprep.subr.msk.bf16.mxu1 %vm969_vm6, %v730_v7  ;;  %v145_v10 = vpop.xlane.xlu1 %144 }
 0x217   :  { %v156_v12 = vsub.f32 %v152_v8, %v154_v9  ;;  %v151_v13 = vmul.f32 0.03125, %v145_v10  ;;  %735 = vmatpush3.bf16.xpose.msk.msra.mxu1 %vm969_vm6, %v730_v7 }
 0x219   :  { %v758_v15 = vpop.eup %757  ;;  %v158_v16 = vmax.f32 %v156_v12, 0.0  ;;  %v155_v17 = vsub.f32 %v151_v13, %v153_v11 }
 0x21a   :  { %v462_v18 = vmul.f32 %v758_v15, %v458_v14 }
 0x21b   :  { %v160_v19 = vadd.f32 1e-12, %v158_v16  ;;  %v157_v20 = vmax.f32 %v155_v17, 0.0 }
 0x21c   :  { %v470_v25 = vmul.f32 %v466_v38, %v462_v18 }
 0x21d   :  { %v760_v22 = vpop.eup %759  ;;  %761 = vrsqrt.f32 %v160_v19  ;;  %v159_v23 = vadd.f32 1e-12, %v157_v20 }
 0x21e   :  { %v461_v24 = vmul.f32 %v760_v22, %v457_v21  ;;  %v478_v28 = vadd.f32 %v474_v57, %v470_v25 }
 0x21f   :  { %763 = vrsqrt.f32 %v159_v23 }
 0x220   :  { %v469_v26 = vmul.f32 %v466_v38, %v461_v24  ;;  %v176_v38 = vrot.slane %v918_v44, %v175_v3 }
 0x222   :  { %v477_v27 = vadd.f32 %v474_v57, %v469_v26 }
 0x224   :  { %v736_v63 = vpack.c.bf16 %v478_v28, %v477_v27 }
 0x226   :  { %738 = vmatprep.subr.msk.bf16.mxu1 %vm969_vm6, %v736_v63 }
 0x227   :  { %v762_v31 = vpop.eup %761  ;;  %741 = vmatpush3.bf16.xpose.msk.msra.mxu1 %vm969_vm6, %v736_v63 }
 0x228   :  { %v166_v34 = vmul.f32 %v762_v31, %v164_v30 }
 0x229   :  { %v764_v35 = vpop.eup %763 }
 0x22a   :  { %v165_v36 = vmul.f32 %v764_v35, %v163_v33  ;;  %v172_v37 = vmul.f32 %v170_v32, %v166_v34 }
 0x22c   :  { %v171_v43 = vmul.f32 %v170_v32, %v165_v36  ;;  %v178_v40 = vadd.f32 %v176_v38, %v172_v37 }
 0x22e   :  { %v177_v39 = vadd.f32 %v176_v38, %v171_v43 }
 0x230   :  { %703 = vmatprep.mubr.msk.f32.mxu1 %vm134_vm0, %v177_v39 }
 0x231   :  { %704 = vmatmul.mubr.msk.f32.vlgmr.msra.gmra.mrb[4].mxu1 %vm134_vm0, %v178_v40 }
 0x304   :  { %v705_v41 = vpop.f32.mrb[4].mxu1 }
 0x305   :  { %581 = vrot.lane.b32.xlu1 %v705_v41, %s791_s3  ;;  %v563_v42 = vpop.f32.mrb[5].mxu1 }
 0x306   :  { %588 = vst.msk [vmem:[#allocation2] sm:$0xff] %vm587_vm7, %v563_v42 }
 0x377   :  { %v582_v45 = vpop.permute.xlu1 %581 }
 0x378   :  { %589 = vst.msk [vmem:[#allocation2 + $0x8] sm:$0xff] %vm587_vm7, %v582_v45 }
 0x379   :  { %776 = shalt.err (!%p773_p4)
}
 0x37a   :  { %s777_s24 = scalar_lea.hbm %s1010_s7, 256 }
 0x37b   :  { %p778_p5 = scmp.ne.s32.totalorder %s1010_s7, %s777_s24  ;;  %p781_p6 = scmp.lt.u32.totalorder %s777_s24, %s1010_s7 }
 0x37d   :  { %p783_p7 = pnand %p781_p6, %p778_p5 }
 0x37f   :  { %786 = shalt.err (!%p783_p7)
}
 0x380   :  { %s793_s28 = smov 128   ;;  %s794_s29 = smov 8  }
 0x381   :  { %601 = dma.vmem_to_hbm [thread:$0]  %s596_s0, 256, %s1010_s7, [#allocation3], %s793_s28, %s793_s28, %s794_s29  }
 0x382   :  { %787 = dma.done.wait [#allocation3], 256  }
 0x383   :  { %788 = vsyncadd [#allocation3], 4294967040 }
 0x384   :  { %605 = vsyncpa [#allocation3], 1 }

</bundles_post_ra>
